<compile_context>
chip_gen: v7x
topology: tpu7x:2x2x1
jax: 0.10.0
libtpu: 0.0.40
codegen_flags: <defaults>
</compile_context>

<pallas_src>
import jax
import jax.numpy as jnp
from jax import lax
from jax.experimental import pallas as pl
from jax.experimental.pallas import tpu as pltpu


def make_dqn2_kernel(chunk, num_chunks):
    """chunk: rows per inner sub-chunk; num_chunks: sub-chunks per grid tile."""

    def kernel(x_ref, w1_ref, w2_ref, w3_ref, b1_ref, b2_ref, b3_ref, out_ref):
        # Weights/biases are small and VMEM-resident; load once per step
        # (hoisted out of the inner loop -> no re-broadcast per chunk).
        w1 = w1_ref[...]                       # (in,  n1) bf16
        w2 = w2_ref[...]                       # (n1,  n2) bf16
        w3 = w3_ref[...]                       # (n2, out) bf16
        b1 = b1_ref[...]                       # (1, n1) f32
        b2 = b2_ref[...]                       # (1, n2) f32
        b3 = b3_ref[...]                       # (out, 1) f32 (column, for transposed head)
        cdt = w1_ref.dtype

        def chunk_body(c, carry):
            r = c * chunk
            if not isinstance(r, int):
                r = pl.multiple_of(r, chunk)
            # f32 -> bf16 cast happens in-register on the VPU (huge slack here).
            x = x_ref[pl.ds(r, chunk), :].astype(cdt)

            # fc1 + relu : bf16 MXU matmul, f32 accumulate, f32 bias+relu.
            h1 = jnp.dot(x, w1, preferred_element_type=jnp.float32)
            h1 = jnp.maximum(h1 + b1, 0.0).astype(cdt)

            # fc2 + relu
            h2 = jnp.dot(h1, w2, preferred_element_type=jnp.float32)
            h2 = jnp.maximum(h2 + b2, 0.0).astype(cdt)

            # fc3 + relu, computed transposed: (outputs, chunk) so the stored
            # minor dim is `chunk` (multiple of 128) -> unmasked lane-dense store.
            h3 = lax.dot_general(w3, h2, (((0,), (1,)), ((), ())),
                                 preferred_element_type=jnp.float32)
            out_ref[c] = jnp.maximum(h3 + b3, 0.0).astype(out_ref.dtype)
            return carry

        if num_chunks == 1:
            chunk_body(0, 0)
        else:
            # Fixed trip count, fully unrolled: keeps per-chunk live ranges
            # bounded while giving the scheduler full visibility.
            lax.fori_loop(0, num_chunks, chunk_body, 0, unroll=True)

    return kernel


def dqn2_forward(x, params, *, batch_tile=512):
    """x: (B, inputs) f32.  params: bf16 weights stored as (in, out), f32 biases (out,)."""
    w1, w2, w3 = params["w1"], params["w2"], params["w3"]
    b1 = params["b1"].reshape(1, -1).astype(jnp.float32)
    b2 = params["b2"].reshape(1, -1).astype(jnp.float32)
    b3t = params["b3"].reshape(-1, 1).astype(jnp.float32)   # (outputs, 1) column

    B, inputs = x.shape
    n1, n2, outputs = w1.shape[1], w2.shape[1], w3.shape[1]

    CHUNK = 256  # inner sub-chunk rows: bounds vreg live ranges inside the big tile
    if B <= CHUNK:
        tb, chunk, num_chunks = B, B, 1          # whole batch = one grid step, one chunk
    else:
        tb = max(CHUNK, (max(batch_tile, CHUNK) // CHUNK) * CHUNK)  # multiple of CHUNK
        tb = min(tb, pl.cdiv(B, CHUNK) * CHUNK)                     # no pointlessly huge tile
        chunk = CHUNK
        num_chunks = tb // CHUNK
    grid_steps = pl.cdiv(B, tb)                  # ragged tail -> Pallas partial-block masking
    n_total_chunks = grid_steps * num_chunks
    rows_total = n_total_chunks * chunk          # >= B; wrapper slices back to B

    flops = 2 * B * (inputs * n1 + n1 * n2 + n2 * outputs)
    bytes_accessed = (
        int(x.size) * x.dtype.itemsize
        + B * outputs * 4
        + sum(int(w.size) * w.dtype.itemsize for w in (w1, w2, w3))
        + (n1 + n2 + outputs) * 4
    )

    out = pl.pallas_call(
        make_dqn2_kernel(chunk, num_chunks),
        out_shape=jax.ShapeDtypeStruct((n_total_chunks, outputs, chunk), jnp.float32),
        grid_spec=pltpu.PrefetchScalarGridSpec(
            num_scalar_prefetch=0,
            grid=(grid_steps,),
            in_specs=[
                pl.BlockSpec((tb, inputs), lambda i: (i, 0)),   # batch-tiled f32 x
                pl.BlockSpec(w1.shape, lambda i: (0, 0)),       # VMEM-resident weights
                pl.BlockSpec(w2.shape, lambda i: (0, 0)),
                pl.BlockSpec(w3.shape, lambda i: (0, 0)),
                pl.BlockSpec(b1.shape, lambda i: (0, 0)),
                pl.BlockSpec(b2.shape, lambda i: (0, 0)),
                pl.BlockSpec(b3t.shape, lambda i: (0, 0)),
            ],
            out_specs=pl.BlockSpec((num_chunks, outputs, chunk),
                                   lambda i: (i, 0, 0)),
        ),
        compiler_params=pltpu.CompilerParams(
            dimension_semantics=("parallel",),   # shard batch tiles across TCs (v7x)
        ),
        cost_estimate=pl.CostEstimate(
            flops=flops, transcendentals=0, bytes_accessed=bytes_accessed),
    )(x, w1, w2, w3, b1, b2, b3t)

    # (chunks, outputs, chunk) -> (chunks, chunk, outputs) -> (rows_total, outputs).
    # Output is tiny (B x 8); this wrapper transpose is negligible.
    out = out.transpose(0, 2, 1).reshape(rows_total, outputs)
    return out[:B]


def init_params(key, inputs, nodes1, nodes2, outputs):
    """PyTorch-style Linear init U(-1/sqrt(fan_in), 1/sqrt(fan_in)).
    Weights stored as (in, out) = W.T relative to torch's (out, in); weights
    are cast to bf16 for the MXU, biases kept in f32."""
    def linear(k, fan_in, fan_out):
        kw, kb = jax.random.split(k)
        bound = 1.0 / jnp.sqrt(fan_in)
        w = jax.random.uniform(kw, (fan_in, fan_out), jnp.float32, -bound, bound)
        b = jax.random.uniform(kb, (fan_out,), jnp.float32, -bound, bound)
        return w.astype(jnp.bfloat16), b

    k1, k2, k3 = jax.random.split(key, 3)
    w1, b1 = linear(k1, inputs, nodes1)
    w2, b2 = linear(k2, nodes1, nodes2)
    w3, b3 = linear(k3, nodes2, outputs)
    return {"w1": w1, "b1": b1, "w2": w2, "b2": b2, "w3": w3, "b3": b3}


def dqn2_ref(x, p):
    """Pure-JAX reference with identical numerics (bf16 inputs, f32 accum)."""
    wd = p["w1"].dtype
    h = jnp.dot(x.astype(wd), p["w1"], preferred_element_type=jnp.float32)
    h = jnp.maximum(h + p["b1"], 0.0)
    h = jnp.dot(h.astype(wd), p["w2"], preferred_element_type=jnp.float32)
    h = jnp.maximum(h + p["b2"], 0.0)
    h = jnp.dot(h.astype(wd), p["w3"], preferred_element_type=jnp.float32)
    return jnp.maximum(h + p["b3"], 0.0)


if __name__ == "__main__":
    # Shapes consistent with the module: inputs=32, nodes1=64, nodes2=32, outputs=8.
    inputs, nodes1, nodes2, outputs = 32, 64, 32, 8
    key = jax.random.PRNGKey(0)
    kx1, kx2, kp = jax.random.split(key, 3)
    params = init_params(kp, inputs, nodes1, nodes2, outputs)

    # Case 1 (small batch): single grid step, single inner chunk, lane-dense store.
    B1 = 256
    x1 = jax.random.normal(kx1, (B1, inputs), jnp.float32)
    out1 = jax.block_until_ready(dqn2_forward(x1, params))
    ref1 = dqn2_ref(x1, params)
    assert out1.shape == (B1, outputs)
    assert jnp.allclose(out1, ref1, atol=1e-3, rtol=1e-3)

    # Case 2 (larger, ragged batch): 2 "parallel" grid steps x 2-chunk inner
    # fori_loop; ragged tail handled by Pallas partial-block masking (no pad).
    B2 = 1000
    x2 = jax.random.normal(kx2, (B2, inputs), jnp.float32)
    out2 = jax.block_until_ready(dqn2_forward(x2, params, batch_tile=512))
    ref2 = dqn2_ref(x2, params)
    assert out2.shape == (B2, outputs)
    assert jnp.allclose(out2, ref2, atol=1e-3, rtol=1e-3)

    print("KERNEL_OK")
</pallas_src>

<mosaic_0001>
module attributes {stable_mosaic.version = 11 : i64} {
  func.func @kernel(%arg0: i32, %arg1: memref<256x32xf32, #tpu.memory_space<vmem>>, %arg2: memref<32x64xbf16, #tpu.memory_space<vmem>>, %arg3: memref<64x32xbf16, #tpu.memory_space<vmem>>, %arg4: memref<32x8xbf16, #tpu.memory_space<vmem>>, %arg5: memref<1x64xf32, #tpu.memory_space<vmem>>, %arg6: memref<1x32xf32, #tpu.memory_space<vmem>>, %arg7: memref<8x1xf32, #tpu.memory_space<vmem>>, %arg8: memref<1x8x256xf32, #tpu.memory_space<vmem>>) attributes {dimension_semantics = [#tpu.dimension_semantics<parallel>], iteration_bounds = array<i64: 1>, scalar_prefetch = 0 : i64, scratch_operands = 0 : i64, tpu.core_type = #tpu.core_type<tc>, window_params = [{transform_indices = @transform_0, window_bounds = array<i64: 256, 32>}, {pipeline_mode = #tpu.pipeline_mode<synchronous>, transform_indices = @transform_1, window_bounds = array<i64: 32, 64>}, {pipeline_mode = #tpu.pipeline_mode<synchronous>, transform_indices = @transform_2, window_bounds = array<i64: 64, 32>}, {pipeline_mode = #tpu.pipeline_mode<synchronous>, transform_indices = @transform_3, window_bounds = array<i64: 32, 8>}, {pipeline_mode = #tpu.pipeline_mode<synchronous>, transform_indices = @transform_4, window_bounds = array<i64: 1, 64>}, {pipeline_mode = #tpu.pipeline_mode<synchronous>, transform_indices = @transform_5, window_bounds = array<i64: 1, 32>}, {pipeline_mode = #tpu.pipeline_mode<synchronous>, transform_indices = @transform_6, window_bounds = array<i64: 8, 1>}, {transform_indices = @transform_7, window_bounds = array<i64: 1, 8, 256>}]} {
    %c0 = arith.constant 0 : index
    %c0_0 = arith.constant 0 : index
    %0 = vector.load %arg2[%c0, %c0_0] : memref<32x64xbf16, #tpu.memory_space<vmem>>, vector<32x64xbf16>
    %c0_1 = arith.constant 0 : index
    %c0_2 = arith.constant 0 : index
    %1 = vector.load %arg3[%c0_1, %c0_2] : memref<64x32xbf16, #tpu.memory_space<vmem>>, vector<64x32xbf16>
    %c0_3 = arith.constant 0 : index
    %c0_4 = arith.constant 0 : index
    %2 = vector.load %arg4[%c0_3, %c0_4] : memref<32x8xbf16, #tpu.memory_space<vmem>>, vector<32x8xbf16>
    %c0_5 = arith.constant 0 : index
    %c0_6 = arith.constant 0 : index
    %3 = vector.load %arg5[%c0_5, %c0_6] : memref<1x64xf32, #tpu.memory_space<vmem>>, vector<1x64xf32>
    %c0_7 = arith.constant 0 : index
    %c0_8 = arith.constant 0 : index
    %4 = vector.load %arg6[%c0_7, %c0_8] : memref<1x32xf32, #tpu.memory_space<vmem>>, vector<1x32xf32>
    %c0_9 = arith.constant 0 : index
    %c0_10 = arith.constant 0 : index
    %5 = vector.load %arg7[%c0_9, %c0_10] : memref<8x1xf32, #tpu.memory_space<vmem>>, vector<8x1xf32>
    %c0_11 = arith.constant 0 : index
    %c0_12 = arith.constant 0 : index
    %6 = vector.load %arg1[%c0_11, %c0_12] : memref<256x32xf32, #tpu.memory_space<vmem>>, vector<256x32xf32>
    %7 = arith.truncf %6 : vector<256x32xf32> to vector<256x32xbf16>
    %cst = arith.constant dense<0.000000e+00> : vector<256x64xf32>
    %8 = tpu.matmul %7, %0, %cst {dimension_numbers = #tpu.dot_dimension_numbers<[1], [0], [0], [1], [0, 0, 1, 1], [], []>} : vector<256x32xbf16>, vector<32x64xbf16>, vector<256x64xf32> -> vector<256x64xf32>
    %9 = vector.broadcast %3 : vector<1x64xf32> to vector<256x64xf32>
    %10 = arith.addf %8, %9 : vector<256x64xf32>
    %cst_13 = arith.constant 0.000000e+00 : f32
    %11 = vector.broadcast %cst_13 : f32 to vector<256x64xf32>
    %12 = arith.maximumf %10, %11 : vector<256x64xf32>
    %13 = arith.truncf %12 : vector<256x64xf32> to vector<256x64xbf16>
    %cst_14 = arith.constant dense<0.000000e+00> : vector<256x32xf32>
    %14 = tpu.matmul %13, %1, %cst_14 {dimension_numbers = #tpu.dot_dimension_numbers<[1], [0], [0], [1], [0, 0, 1, 1], [], []>} : vector<256x64xbf16>, vector<64x32xbf16>, vector<256x32xf32> -> vector<256x32xf32>
    %15 = vector.broadcast %4 : vector<1x32xf32> to vector<256x32xf32>
    %16 = arith.addf %14, %15 : vector<256x32xf32>
    %cst_15 = arith.constant 0.000000e+00 : f32
    %17 = vector.broadcast %cst_15 : f32 to vector<256x32xf32>
    %18 = arith.maximumf %16, %17 : vector<256x32xf32>
    %19 = arith.truncf %18 : vector<256x32xf32> to vector<256x32xbf16>
    %cst_16 = arith.constant dense<0.000000e+00> : vector<8x256xf32>
    %20 = tpu.matmul %2, %19, %cst_16 {dimension_numbers = #tpu.dot_dimension_numbers<[0], [1], [1], [0], [0, 1, 1, 0], [], []>} : vector<32x8xbf16>, vector<256x32xbf16>, vector<8x256xf32> -> vector<8x256xf32>
    %21 = vector.broadcast %5 : vector<8x1xf32> to vector<8x256xf32>
    %22 = arith.addf %20, %21 : vector<8x256xf32>
    %cst_17 = arith.constant 0.000000e+00 : f32
    %23 = vector.broadcast %cst_17 : f32 to vector<8x256xf32>
    %24 = arith.maximumf %22, %23 : vector<8x256xf32>
    %c0_18 = arith.constant 0 : index
    %c0_19 = arith.constant 0 : index
    %c0_20 = arith.constant 0 : index
    %25 = vector.load %arg8[%c0_18, %c0_19, %c0_20] : memref<1x8x256xf32, #tpu.memory_space<vmem>>, vector<1x8x256xf32>
    %26 = vector.shape_cast %25 : vector<1x8x256xf32> to vector<8x256xf32>
    %27 = vector.shape_cast %24 : vector<8x256xf32> to vector<1x8x256xf32>
    tpu.vector_store %arg8[%c0_18, %c0_19, %c0_20], %27 {strides = array<i32>} : memref<1x8x256xf32, #tpu.memory_space<vmem>>, vector<1x8x256xf32>,
    return
  }
  func.func @transform_0(%arg0: i32) -> (i32, i32) {
    %c0_i32 = arith.constant 0 : i32
    %c0_i32_0 = arith.constant 0 : i32
    return %arg0, %c0_i32 : i32, i32
  }
  func.func @transform_1(%arg0: i32) -> (i32, i32) {
    %c0_i32 = arith.constant 0 : i32
    %c0_i32_0 = arith.constant 0 : i32
    %c0_i32_1 = arith.constant 0 : i32
    return %c0_i32, %c0_i32_0 : i32, i32
  }
  func.func @transform_2(%arg0: i32) -> (i32, i32) {
    %c0_i32 = arith.constant 0 : i32
    %c0_i32_0 = arith.constant 0 : i32
    %c0_i32_1 = arith.constant 0 : i32
    return %c0_i32, %c0_i32_0 : i32, i32
  }
  func.func @transform_3(%arg0: i32) -> (i32, i32) {
    %c0_i32 = arith.constant 0 : i32
    %c0_i32_0 = arith.constant 0 : i32
    %c0_i32_1 = arith.constant 0 : i32
    return %c0_i32, %c0_i32_0 : i32, i32
  }
  func.func @transform_4(%arg0: i32) -> (i32, i32) {
    %c0_i32 = arith.constant 0 : i32
    %c0_i32_0 = arith.constant 0 : i32
    %c0_i32_1 = arith.constant 0 : i32
    return %c0_i32, %c0_i32_0 : i32, i32
  }
  func.func @transform_5(%arg0: i32) -> (i32, i32) {
    %c0_i32 = arith.constant 0 : i32
    %c0_i32_0 = arith.constant 0 : i32
    %c0_i32_1 = arith.constant 0 : i32
    return %c0_i32, %c0_i32_0 : i32, i32
  }
  func.func @transform_6(%arg0: i32) -> (i32, i32) {
    %c0_i32 = arith.constant 0 : i32
    %c0_i32_0 = arith.constant 0 : i32
    %c0_i32_1 = arith.constant 0 : i32
    return %c0_i32, %c0_i32_0 : i32, i32
  }
  func.func @transform_7(%arg0: i32) -> (i32, i32, i32) {
    %c0_i32 = arith.constant 0 : i32
    %c0_i32_0 = arith.constant 0 : i32
    %c0_i32_1 = arith.constant 0 : i32
    return %arg0, %c0_i32, %c0_i32_0 : i32, i32, i32
  }
}

</mosaic_0001>

<bundles_post_ra>
// kernel: tpu_custom_call.1
= control target key start
LH: loop header
LB: loop body
LE: loop exit
PB: predicated region body
PF: predicated region fallthrough
CT: control target
= control target key end

     0   :  { %vm113_vm0 = vcmask 261120   ;;  %s1350_s0 = inlined_call_operand.vmem [shape: f32[256,32], index: 0, kind: input, shape index: {}]   ;;  %s1351_s1 = inlined_call_operand.vmem [shape: bf16[32,64], index: 1, kind: input, shape index: {}]   ;;  %s1352_s2 = inlined_call_operand.vmem [shape: bf16[64,32], index: 2, kind: input, shape index: {}]   ;;  %s1353_s3 = inlined_call_operand.vmem [shape: bf16[32,8], index: 3, kind: input, shape index: {}]   ;;  %s1354_s4 = inlined_call_operand.vmem [shape: f32[1,64], index: 4, kind: input, shape index: {}]   ;;  %s1355_s5 = inlined_call_operand.vmem [shape: f32[1,32], index: 5, kind: input, shape index: {}]   ;;  %s1356_s6 = inlined_call_operand.vmem [shape: f32[8,1], index: 6, kind: input, shape index: {}]   ;;  %s1357_s7 = inlined_call_operand.hbm [shape: f32[1,8,256], index: 7, kind: output, shape index: {}]  }
   0x1   :  { %v989_v0 = vld [vmem:[%s1351_s1] sm:$0xff]   ;;  %v990_v1 = vld [vmem:[%s1351_s1 + $0x8] sm:$0xff]   ;;  %v49_v5 = vld [vmem:[%s1350_s0 + $0x10] sm:$0xff] }
   0x2   :  { %901 = vmatprep.subr.bf16.mxu0 %v989_v0  ;;  %v47_v2 = vld [vmem:[%s1350_s0] sm:$0xff]  ;;  %v48_v3 = vld [vmem:[%s1350_s0 + $0x8] sm:$0xff]  ;;  %v50_v6 = vld [vmem:[%s1350_s0 + $0x18] sm:$0xff] }
   0x3   :  { %902 = vmatpush3.bf16.msra.mxu0 %v989_v0  ;;  %v79_v4 = vpack.c.bf16 %v48_v3, %v47_v2  ;;  %v51_v7 = vld [vmem:[%s1350_s0 + $0x20] sm:$0xff]  ;;  %v52_v8 = vld [vmem:[%s1350_s0 + $0x28] sm:$0xff]  ;;  %v80_v9 = vpack.c.bf16 %v50_v6, %v49_v5  ;;  %v53_v11 = vld [vmem:[%s1350_s0 + $0x30] sm:$0xff] }
   0x4   :  { %903 = vmatprep.subr.bf16.mxu0 %v990_v1  ;;  %v81_v10 = vpack.c.bf16 %v52_v8, %v51_v7  ;;  %v54_v12 = vld [vmem:[%s1350_s0 + $0x38] sm:$0xff]  ;;  %v55_v13 = vld [vmem:[%s1350_s0 + $0x40] sm:$0xff]  ;;  %v56_v14 = vld [vmem:[%s1350_s0 + $0x48] sm:$0xff] }
   0x5   :  { %905 = vmatprep.mubr.msk.bf16.mxu0 %vm113_vm0, %v79_v4  ;;  %v991_v15 = vld [vmem:[%s1352_s2] sm:$0xff]   ;;  %v82_v16 = vpack.c.bf16 %v54_v12, %v53_v11  ;;  %v992_v17 = vld [vmem:[%s1352_s2 + $0x8] sm:$0xff]   ;;  %v83_v18 = vpack.c.bf16 %v56_v14, %v55_v13 }
   0x6   :  { %937 = vmatprep.subr.bf16.mxu1 %v991_v15 }
   0x7   :  { %904 = vmatpush3.bf16.msra.mxu0 %v990_v1  ;;  %938 = vmatpush3.bf16.msra.mxu1 %v991_v15 }
   0x8   :  { %939 = vmatprep.subr.bf16.mxu1 %v992_v17 }
   0xa   :  { %906 = vmatmul.mubr.msk.bf16.vlgmr.msra.gmra.mrb[0].mxu0 %vm113_vm0, %v80_v9 }
   0xb   :  { %909 = vmatprep.mubr.msk.bf16.mxu0 %vm113_vm0, %v81_v10 }
   0xc   :  { %12 = vsyncpa [#allocation3], 0  ;;  %v57_v19 = vld [vmem:[%s1350_s0 + $0x50] sm:$0xff]  ;;  %v58_v20 = vld [vmem:[%s1350_s0 + $0x58] sm:$0xff]  ;;  %940 = vmatpush3.bf16.msra.mxu1 %v992_v17  ;;  %vm401_vm1 = vcmask 523264  }
   0xd   :  { %v59_v21 = vld [vmem:[%s1350_s0 + $0x60] sm:$0xff]  ;;  %v60_v22 = vld [vmem:[%s1350_s0 + $0x68] sm:$0xff]  ;;  %v84_v23 = vpack.c.bf16 %v58_v20, %v57_v19  ;;  %v61_v25 = vld [vmem:[%s1350_s0 + $0x70] sm:$0xff] }
   0xe   :  { %v85_v24 = vpack.c.bf16 %v60_v22, %v59_v21  ;;  %v62_v26 = vld [vmem:[%s1350_s0 + $0x78] sm:$0xff]  ;;  %v63_v27 = vld [vmem:[%s1350_s0 + $0x80] sm:$0xff]  ;;  %v64_v28 = vld [vmem:[%s1350_s0 + $0x88] sm:$0xff] }
   0xf   :  { %v86_v29 = vpack.c.bf16 %v62_v26, %v61_v25  ;;  %v87_v30 = vpack.c.bf16 %v64_v28, %v63_v27  ;;  %v65_v31 = vld [vmem:[%s1350_s0 + $0x90] sm:$0xff]  ;;  %v66_v32 = vld [vmem:[%s1350_s0 + $0x98] sm:$0xff]  ;;  %v67_v33 = vld [vmem:[%s1350_s0 + $0xa0] sm:$0xff] }
  0x10   :  { %v68_v34 = vld [vmem:[%s1350_s0 + $0xa8] sm:$0xff]  ;;  %v88_v35 = vpack.c.bf16 %v66_v32, %v65_v31  ;;  %v69_v37 = vld [vmem:[%s1350_s0 + $0xb0] sm:$0xff]  ;;  %v70_v38 = vld [vmem:[%s1350_s0 + $0xb8] sm:$0xff] }
  0x11   :  { %v89_v36 = vpack.c.bf16 %v68_v34, %v67_v33  ;;  %v71_v39 = vld [vmem:[%s1350_s0 + $0xc0] sm:$0xff]  ;;  %v72_v40 = vld [vmem:[%s1350_s0 + $0xc8] sm:$0xff]  ;;  %v90_v41 = vpack.c.bf16 %v70_v38, %v69_v37  ;;  %v73_v43 = vld [vmem:[%s1350_s0 + $0xd0] sm:$0xff] }
  0x12   :  { %910 = vmatmul.mubr.msk.bf16.gmra.mrb[4].mxu0 %vm113_vm0, %v82_v16  ;;  %v91_v42 = vpack.c.bf16 %v72_v40, %v71_v39  ;;  %v74_v44 = vld [vmem:[%s1350_s0 + $0xd8] sm:$0xff]  ;;  %v75_v45 = vld [vmem:[%s1350_s0 + $0xe0] sm:$0xff]  ;;  %v76_v46 = vld [vmem:[%s1350_s0 + $0xe8] sm:$0xff] }
  0x13   :  { %913 = vmatprep.mubr.msk.bf16.mxu0 %vm113_vm0, %v83_v18  ;;  %v92_v47 = vpack.c.bf16 %v74_v44, %v73_v43  ;;  %v93_v48 = vpack.c.bf16 %v76_v46, %v75_v45  ;;  %v77_v49 = vld [vmem:[%s1350_s0 + $0xf0] sm:$0xff]  ;;  %v78_v50 = vld [vmem:[%s1350_s0 + $0xf8] sm:$0xff]  ;;  %v1196_v54 = vld [vmem:[%s1354_s4] ss:$0 sm:$0xff] }
  0x14   :  { %v94_v51 = vpack.c.bf16 %v78_v50, %v77_v49  ;;  %v993_v52 = vld [vmem:[%s1352_s2 + $0x10] sm:$0xff]   ;;  %v994_v53 = vld [vmem:[%s1352_s2 + $0x18] sm:$0xff]  }
  0x15   :  { %941 = vmatprep.subr.bf16.mxu1 %v993_v52 }
  0x16   :  { %942 = vmatpush3.bf16.msra.mxu1 %v993_v52 }
  0x17   :  { %943 = vmatprep.subr.bf16.mxu1 %v994_v53 }
  0x1a   :  { %914 = vmatmul.mubr.msk.bf16.gmra.mrb[8].mxu0 %vm113_vm0, %v84_v23  ;;  %944 = vmatpush3.bf16.msra.mxu1 %v994_v53 }
  0x1b   :  { %917 = vmatprep.mubr.msk.bf16.mxu0 %vm113_vm0, %v85_v24 }
  0x22   :  { %918 = vmatmul.mubr.msk.bf16.gmra.mrb[12].mxu0 %vm113_vm0, %v86_v29 }
  0x23   :  { %921 = vmatprep.mubr.msk.bf16.mxu0 %vm113_vm0, %v87_v30 }
  0x2a   :  { %922 = vmatmul.mubr.msk.bf16.gmra.mrb[16].mxu0 %vm113_vm0, %v88_v35 }
  0x2b   :  { %925 = vmatprep.mubr.msk.bf16.mxu0 %vm113_vm0, %v89_v36 }
  0x32   :  { %926 = vmatmul.mubr.msk.bf16.gmra.mrb[20].mxu0 %vm113_vm0, %v90_v41 }
  0x33   :  { %929 = vmatprep.mubr.msk.bf16.mxu0 %vm113_vm0, %v91_v42 }
  0x3a   :  { %930 = vmatmul.mubr.msk.bf16.gmra.mrb[24].mxu0 %vm113_vm0, %v92_v47 }
  0x3b   :  { %933 = vmatprep.mubr.msk.bf16.mxu0 %vm113_vm0, %v93_v48 }
  0x42   :  { %934 = vmatmul.mubr.msk.bf16.gmra.mrb[28].mxu0 %vm113_vm0, %v94_v51 }
  0xdd   :  { %v907_v55 = vpop.f32.mrb[0].mxu0 }
  0xde   :  { %v205_v56 = vadd.f32 %v907_v55, %v1196_v54  ;;  %v196_v57 = vpop.f32.mrb[1].mxu0 }
  0xdf   :  { %v197_v58 = vadd.f32 %v1196_v54, %v196_v57  ;;  %v908_v59 = vpop.f32.mrb[2].mxu0 }
  0xe0   :  { %v208_v60 = vadd.f32 %v908_v59, %v1196_v54  ;;  %v199_v61 = vpop.f32.mrb[3].mxu0  ;;  %v325_v63 = vmax.f32 %v205_v56, 0.0 }
  0xe1   :  { %v200_v62 = vadd.f32 %v1196_v54, %v199_v61  ;;  %v323_v1 = vmax.f32 %v197_v58, 0.0 }
  0xe2   :  { %v326_v0 = vmax.f32 %v208_v60, 0.0 }
  0xe3   :  { %v324_v2 = vmax.f32 %v200_v62, 0.0 }
  0xe4   :  { %v356_v3 = vpack.c.bf16 %v326_v0, %v325_v63 }
  0xe5   :  { %v911_v4 = vpop.f32.mrb[4].mxu0  ;;  %v355_v5 = vpack.c.bf16 %v324_v2, %v323_v1 }
  0xe6   :  { %v221_v6 = vadd.f32 %v911_v4, %v1196_v54  ;;  %v212_v7 = vpop.f32.mrb[5].mxu0 }
  0xe7   :  { %v213_v8 = vadd.f32 %v1196_v54, %v212_v7  ;;  %v912_v9 = vpop.f32.mrb[6].mxu0  ;;  %945 = vmatprep.mubr.msk.bf16.mxu1 %vm401_vm1, %v355_v5 }
  0xe8   :  { %v224_v10 = vadd.f32 %v912_v9, %v1196_v54  ;;  %v215_v11 = vpop.f32.mrb[7].mxu0  ;;  %946 = vmatmul.mubr.msk.bf16.vlgmr.msra.gmra.mrb[0].mxu1 %vm401_vm1, %v356_v3  ;;  %v329_v13 = vmax.f32 %v221_v6, 0.0 }
  0xe9   :  { %v216_v12 = vadd.f32 %v1196_v54, %v215_v11  ;;  %v327_v15 = vmax.f32 %v213_v8, 0.0 }
  0xea   :  { %v330_v14 = vmax.f32 %v224_v10, 0.0 }
  0xeb   :  { %v328_v16 = vmax.f32 %v216_v12, 0.0 }
  0xec   :  { %v358_v17 = vpack.c.bf16 %v330_v14, %v329_v13 }
  0xed   :  { %v357_v18 = vpack.c.bf16 %v328_v16, %v327_v15  ;;  %v915_v19 = vpop.f32.mrb[8].mxu0 }
  0xee   :  { %v237_v20 = vadd.f32 %v915_v19, %v1196_v54  ;;  %v228_v21 = vpop.f32.mrb[9].mxu0 }
  0xef   :  { %v229_v22 = vadd.f32 %v1196_v54, %v228_v21  ;;  %v916_v23 = vpop.f32.mrb[10].mxu0  ;;  %949 = vmatprep.mubr.msk.bf16.mxu1 %vm401_vm1, %v357_v18 }
  0xf0   :  { %v240_v24 = vadd.f32 %v916_v23, %v1196_v54  ;;  %v231_v25 = vpop.f32.mrb[11].mxu0  ;;  %950 = vmatmul.mubr.msk.bf16.gmra.mrb[4].mxu1 %vm401_vm1, %v358_v17  ;;  %v333_v27 = vmax.f32 %v237_v20, 0.0 }
  0xf1   :  { %v232_v26 = vadd.f32 %v1196_v54, %v231_v25  ;;  %v331_v29 = vmax.f32 %v229_v22, 0.0 }
  0xf2   :  { %v334_v28 = vmax.f32 %v240_v24, 0.0 }
  0xf3   :  { %v332_v30 = vmax.f32 %v232_v26, 0.0 }
  0xf4   :  { %v360_v31 = vpack.c.bf16 %v334_v28, %v333_v27 }
  0xf5   :  { %v359_v32 = vpack.c.bf16 %v332_v30, %v331_v29  ;;  %v919_v33 = vpop.f32.mrb[12].mxu0 }
  0xf6   :  { %v253_v34 = vadd.f32 %v919_v33, %v1196_v54  ;;  %v244_v35 = vpop.f32.mrb[13].mxu0 }
  0xf7   :  { %v245_v36 = vadd.f32 %v1196_v54, %v244_v35  ;;  %v920_v37 = vpop.f32.mrb[14].mxu0  ;;  %953 = vmatprep.mubr.msk.bf16.mxu1 %vm401_vm1, %v359_v32 }
  0xf8   :  { %v256_v38 = vadd.f32 %v920_v37, %v1196_v54  ;;  %v247_v39 = vpop.f32.mrb[15].mxu0  ;;  %954 = vmatmul.mubr.msk.bf16.gmra.mrb[8].mxu1 %vm401_vm1, %v360_v31  ;;  %v337_v41 = vmax.f32 %v253_v34, 0.0 }
  0xf9   :  { %v248_v40 = vadd.f32 %v1196_v54, %v247_v39  ;;  %v335_v43 = vmax.f32 %v245_v36, 0.0 }
  0xfa   :  { %v338_v42 = vmax.f32 %v256_v38, 0.0 }
  0xfb   :  { %v336_v44 = vmax.f32 %v248_v40, 0.0  ;;  %v995_v40 = vld [vmem:[%s1353_s3] sm:$0xff]  }
  0xfc   :  { %v362_v45 = vpack.c.bf16 %v338_v42, %v337_v41  ;;  %676 = vxpose.xlu0.c.b16.start [1/2] (short) (narrow) %v995_v40, 16  ;;  %v996_v41 = vld [vmem:[%s1353_s3 + $0x8] sm:$0xff]   ;;  %s1022_s3 = smov [#allocation2]  }
  0xfd   :  { %v361_v46 = vpack.c.bf16 %v336_v44, %v335_v43  ;;  %v923_v47 = vpop.f32.mrb[16].mxu0  ;;  %v1021_v43 = vmov 0   ;;  %v1262_v44 = vld [vmem:[%s1355_s5] ss:$0 sm:$0xff]  ;;  %s794_s5 = sshll.u32 %s1022_s3, 4  ;;  %s795_s5 = int_to_ptr.vmem [resolvable:$true] %s794_s5 }
  0xfe   :  { %v269_v48 = vadd.f32 %v923_v47, %v1196_v54  ;;  %v260_v49 = vpop.f32.mrb[17].mxu0  ;;  %987 = vset.pattern.permute.xlu1 %v1021_v43  ;;  %p1002_p1 = scmp.lt.s32.totalorder %s795_s5, %s795_s5 }
  0xff   :  { %v261_v50 = vadd.f32 %v1196_v54, %v260_v49  ;;  %v924_v51 = vpop.f32.mrb[18].mxu0  ;;  %957 = vmatprep.mubr.msk.bf16.mxu1 %vm401_vm1, %v361_v46 }
 0x100   :  { %v272_v52 = vadd.f32 %v924_v51, %v1196_v54  ;;  %v263_v53 = vpop.f32.mrb[19].mxu0  ;;  %958 = vmatmul.mubr.msk.bf16.gmra.mrb[12].mxu1 %vm401_vm1, %v362_v45  ;;  %v341_v56 = vmax.f32 %v269_v48, 0.0  ;;  %677 = vxpose.xlu0.c.b16.end [2/2] (short) (narrow) %v996_v41, 16 }
 0x101   :  { %v264_v55 = vadd.f32 %v1196_v54, %v263_v53  ;;  %v339_v58 = vmax.f32 %v261_v50, 0.0 }
 0x102   :  { %v342_v57 = vmax.f32 %v272_v52, 0.0 }
 0x103   :  { %v340_v59 = vmax.f32 %v264_v55, 0.0 }
 0x104   :  { %v364_v60 = vpack.c.bf16 %v342_v57, %v341_v56 }
 0x105   :  { %v363_v61 = vpack.c.bf16 %v340_v59, %v339_v58  ;;  %v927_v62 = vpop.f32.mrb[20].mxu0 }
 0x106   :  { %v285_v63 = vadd.f32 %v927_v62, %v1196_v54  ;;  %v276_v0 = vpop.f32.mrb[21].mxu0 }
 0x107   :  { %v277_v1 = vadd.f32 %v1196_v54, %v276_v0  ;;  %961 = vmatprep.mubr.msk.bf16.mxu1 %vm401_vm1, %v363_v61  ;;  %v928_v2 = vpop.f32.mrb[22].mxu0 }
 0x108   :  { %v345_v3 = vmax.f32 %v285_v63, 0.0  ;;  %v288_v4 = vadd.f32 %v928_v2, %v1196_v54  ;;  %962 = vmatmul.mubr.msk.bf16.gmra.mrb[16].mxu1 %vm401_vm1, %v364_v60  ;;  %v279_v5 = vpop.f32.mrb[23].mxu0 }
 0x109   :  { %v343_v6 = vmax.f32 %v277_v1, 0.0  ;;  %v280_v7 = vadd.f32 %v1196_v54, %v279_v5  ;;  %988 = vset.pattern.permute.xlu0 %v1021_v43 }
 0x10a   :  { %v346_v8 = vmax.f32 %v288_v4, 0.0 }
 0x10b   :  { %v344_v9 = vmax.f32 %v280_v7, 0.0 }
 0x10c   :  { %v366_v10 = vpack.c.bf16 %v346_v8, %v345_v3 }
 0x10d   :  { %v365_v11 = vpack.c.bf16 %v344_v9, %v343_v6  ;;  %v931_v12 = vpop.f32.mrb[24].mxu0 }
 0x10e   :  { %v301_v13 = vadd.f32 %v931_v12, %v1196_v54  ;;  %v292_v14 = vpop.f32.mrb[25].mxu0 }
 0x10f   :  { %965 = vmatprep.mubr.msk.bf16.mxu1 %vm401_vm1, %v365_v11  ;;  %v293_v15 = vadd.f32 %v1196_v54, %v292_v14  ;;  %v932_v16 = vpop.f32.mrb[26].mxu0 }
 0x110   :  { %966 = vmatmul.mubr.msk.bf16.gmra.mrb[20].mxu1 %vm401_vm1, %v366_v10  ;;  %v349_v17 = vmax.f32 %v301_v13, 0.0  ;;  %v304_v18 = vadd.f32 %v932_v16, %v1196_v54  ;;  %v295_v19 = vpop.f32.mrb[27].mxu0 }
 0x111   :  { %v347_v20 = vmax.f32 %v293_v15, 0.0  ;;  %v296_v21 = vadd.f32 %v1196_v54, %v295_v19 }
 0x112   :  { %v350_v22 = vmax.f32 %v304_v18, 0.0 }
 0x113   :  { %v348_v23 = vmax.f32 %v296_v21, 0.0 }
 0x114   :  { %v368_v24 = vpack.c.bf16 %v350_v22, %v349_v17 }
 0x115   :  { %v367_v25 = vpack.c.bf16 %v348_v23, %v347_v20  ;;  %v935_v26 = vpop.f32.mrb[28].mxu0 }
 0x116   :  { %v317_v27 = vadd.f32 %v935_v26, %v1196_v54  ;;  %v308_v28 = vpop.f32.mrb[29].mxu0 }
 0x117   :  { %969 = vmatprep.mubr.msk.bf16.mxu1 %vm401_vm1, %v367_v25  ;;  %v309_v29 = vadd.f32 %v1196_v54, %v308_v28  ;;  %v936_v30 = vpop.f32.mrb[30].mxu0 }
 0x118   :  { %970 = vmatmul.mubr.msk.bf16.gmra.mrb[24].mxu1 %vm401_vm1, %v368_v24  ;;  %v353_v31 = vmax.f32 %v317_v27, 0.0  ;;  %v320_v32 = vadd.f32 %v936_v30, %v1196_v54  ;;  %v311_v33 = vpop.f32.mrb[31].mxu0 }
 0x119   :  { %v351_v34 = vmax.f32 %v309_v29, 0.0  ;;  %v312_v35 = vadd.f32 %v1196_v54, %v311_v33  ;;  %v46_v54 = vld [vmem:[%s1356_s6] sm:$0xff]  ;;  %s997_s6 = scalar_lea.vmem %s795_s5, 256 }
 0x11a   :  { %v354_v36 = vmax.f32 %v320_v32, 0.0  ;;  %661 = vperm.xlu1 %987, %v46_v54   ;;  %p998_p0 = scmp.ne.s32.totalorder %s795_s5, %s997_s6  ;;  %p1003_p2 = scmp.lt.s32.totalorder %s997_s6, %s997_s6 }
 0x11b   :  { %v352_v37 = vmax.f32 %v312_v35, 0.0 }
 0x11c   :  { %v370_v38 = vpack.c.bf16 %v354_v36, %v353_v31  ;;  %p1004_p3 = por %p1003_p2, %p1002_p1 }
 0x11d   :  { %v369_v39 = vpack.c.bf16 %v352_v37, %v351_v34 }
 0x11e   :  { %p1005_p4 = pnand %p1004_p3, %p998_p0 }
 0x11f   :  { %973 = vmatprep.mubr.msk.bf16.mxu1 %vm401_vm1, %v369_v39 }
 0x120   :  { %974 = vmatmul.mubr.msk.bf16.gmra.mrb[28].mxu1 %vm401_vm1, %v370_v38 }
 0x162   :  { %v1252_v42 = vpop.trf.xlu0 }
 0x163   :  { %899 = vmatprep.mubr.msk.bf16.mxu0 %vm113_vm0, %v1252_v42 }
 0x1bb   :  { %v947_v45 = vpop.f32.mrb[0].mxu1 }
 0x1bc   :  { %v493_v46 = vadd.f32 %v947_v45, %v1262_v44  ;;  %v484_v47 = vpop.f32.mrb[1].mxu1 }
 0x1bd   :  { %v485_v48 = vadd.f32 %v1262_v44, %v484_v47  ;;  %v948_v49 = vpop.f32.mrb[2].mxu1 }
 0x1be   :  { %v496_v50 = vadd.f32 %v948_v49, %v1262_v44  ;;  %v487_v51 = vpop.f32.mrb[3].mxu1  ;;  %v613_v53 = vmax.f32 %v493_v46, 0.0 }
 0x1bf   :  { %v488_v52 = vadd.f32 %v1262_v44, %v487_v51  ;;  %v611_v56 = vmax.f32 %v485_v48, 0.0 }
 0x1c0   :  { %v614_v55 = vmax.f32 %v496_v50, 0.0 }
 0x1c1   :  { %v612_v57 = vmax.f32 %v488_v52, 0.0 }
 0x1c2   :  { %v1268_v58 = vpack.c.bf16 %v614_v55, %v613_v53 }
 0x1c3   :  { %v1270_v59 = vpack.c.bf16 %v612_v57, %v611_v56  ;;  %v951_v60 = vpop.f32.mrb[4].mxu1 }
 0x1c4   :  { %v509_v61 = vadd.f32 %v951_v60, %v1262_v44  ;;  %v500_v62 = vpop.f32.mrb[5].mxu1 }
 0x1c5   :  { %v501_v63 = vadd.f32 %v1262_v44, %v500_v62  ;;  %v952_v0 = vpop.f32.mrb[6].mxu1 }
 0x1c6   :  { %v512_v1 = vadd.f32 %v952_v0, %v1262_v44  ;;  %v503_v2 = vpop.f32.mrb[7].mxu1  ;;  %v617_v4 = vmax.f32 %v509_v61, 0.0  ;;  %v696_v61 = vsel %vm113_vm0, %v1270_v59, 0  ;;  %v699_v59 = vsel %vm113_vm0, %v1268_v58, 0 }
 0x1c7   :  { %v504_v3 = vadd.f32 %v1262_v44, %v503_v2  ;;  %v615_v6 = vmax.f32 %v501_v63, 0.0 }
 0x1c8   :  { %v618_v5 = vmax.f32 %v512_v1, 0.0 }
 0x1c9   :  { %v616_v7 = vmax.f32 %v504_v3, 0.0 }
 0x1ca   :  { %v1276_v8 = vpack.c.bf16 %v618_v5, %v617_v4 }
 0x1cb   :  { %v1278_v9 = vpack.c.bf16 %v616_v7, %v615_v6  ;;  %v955_v10 = vpop.f32.mrb[8].mxu1 }
 0x1cc   :  { %v525_v11 = vadd.f32 %v955_v10, %v1262_v44  ;;  %v516_v12 = vpop.f32.mrb[9].mxu1 }
 0x1cd   :  { %v517_v13 = vadd.f32 %v1262_v44, %v516_v12  ;;  %v956_v14 = vpop.f32.mrb[10].mxu1 }
 0x1ce   :  { %v528_v15 = vadd.f32 %v956_v14, %v1262_v44  ;;  %v519_v16 = vpop.f32.mrb[11].mxu1  ;;  %v621_v18 = vmax.f32 %v525_v11, 0.0 }
 0x1cf   :  { %v520_v17 = vadd.f32 %v1262_v44, %v519_v16  ;;  %v619_v20 = vmax.f32 %v517_v13, 0.0 }
 0x1d0   :  { %v622_v19 = vmax.f32 %v528_v15, 0.0 }
 0x1d1   :  { %v620_v21 = vmax.f32 %v520_v17, 0.0 }
 0x1d2   :  { %v1284_v22 = vpack.c.bf16 %v622_v19, %v621_v18 }
 0x1d3   :  { %v1286_v23 = vpack.c.bf16 %v620_v21, %v619_v20  ;;  %v959_v24 = vpop.f32.mrb[12].mxu1 }
 0x1d4   :  { %v541_v25 = vadd.f32 %v959_v24, %v1262_v44  ;;  %v532_v26 = vpop.f32.mrb[13].mxu1 }
 0x1d5   :  { %v533_v27 = vadd.f32 %v1262_v44, %v532_v26  ;;  %v960_v28 = vpop.f32.mrb[14].mxu1 }
 0x1d6   :  { %v544_v29 = vadd.f32 %v960_v28, %v1262_v44  ;;  %v535_v30 = vpop.f32.mrb[15].mxu1  ;;  %v625_v32 = vmax.f32 %v541_v25, 0.0 }
 0x1d7   :  { %v536_v31 = vadd.f32 %v1262_v44, %v535_v30  ;;  %v623_v34 = vmax.f32 %v533_v27, 0.0  ;;  %v702_v27 = vsel %vm113_vm0, %v1278_v9, 0  ;;  %v705_v9 = vsel %vm113_vm0, %v1276_v8, 0 }
 0x1d8   :  { %v626_v33 = vmax.f32 %v544_v29, 0.0 }
 0x1d9   :  { %v624_v35 = vmax.f32 %v536_v31, 0.0 }
 0x1da   :  { %v1292_v36 = vpack.c.bf16 %v626_v33, %v625_v32 }
 0x1db   :  { %v1294_v37 = vpack.c.bf16 %v624_v35, %v623_v34  ;;  %v963_v38 = vpop.f32.mrb[16].mxu1 }
 0x1dc   :  { %v557_v39 = vadd.f32 %v963_v38, %v1262_v44  ;;  %v548_v40 = vpop.f32.mrb[17].mxu1  ;;  %v717_v8 = vsel %vm113_vm0, %v1292_v36, 0 }
 0x1dd   :  { %v549_v41 = vadd.f32 %v1262_v44, %v548_v40  ;;  %v964_v54 = vpop.f32.mrb[18].mxu1 }
 0x1de   :  { %v560_v43 = vadd.f32 %v964_v54, %v1262_v44  ;;  %v551_v45 = vpop.f32.mrb[19].mxu1  ;;  %v629_v47 = vmax.f32 %v557_v39, 0.0  ;;  %v711_v54 = vsel %vm113_vm0, %v1284_v22, 0 }
 0x1df   :  { %v552_v46 = vadd.f32 %v1262_v44, %v551_v45  ;;  %v627_v49 = vmax.f32 %v549_v41, 0.0  ;;  %v708_v41 = vsel %vm113_vm0, %v1286_v23, 0  ;;  %v662_v23 = vpop.permute.xlu1 %661 }
 0x1e0   :  { %v630_v48 = vmax.f32 %v560_v43, 0.0 }
 0x1e1   :  { %v628_v50 = vmax.f32 %v552_v46, 0.0 }
 0x1e2   :  { %v652_v51 = vpack.c.bf16 %v630_v48, %v629_v47 }
 0x1e3   :  { %v651_v52 = vpack.c.bf16 %v628_v50, %v627_v49  ;;  %v967_v53 = vpop.f32.mrb[20].mxu1 }
 0x1e4   :  { %v573_v55 = vadd.f32 %v967_v53, %v1262_v44  ;;  %v564_v56 = vpop.f32.mrb[21].mxu1 }
 0x1e5   :  { %v565_v57 = vadd.f32 %v1262_v44, %v564_v56  ;;  %977 = vmatprep.subr.msk.bf16.mxu0 %vm113_vm0, %v651_v52  ;;  %v968_v60 = vpop.f32.mrb[22].mxu1 }
 0x1e6   :  { %v633_v62 = vmax.f32 %v573_v55, 0.0  ;;  %v576_v63 = vadd.f32 %v968_v60, %v1262_v44  ;;  %884 = vmatpush3.bf16.xpose.msra.mxu0 %v696_v61  ;;  %v567_v0 = vpop.f32.mrb[23].mxu1 }
 0x1e7   :  { %v631_v1 = vmax.f32 %v565_v57, 0.0  ;;  %v568_v2 = vadd.f32 %v1262_v44, %v567_v0  ;;  %978 = vmatprep.subr.msk.bf16.mxu0 %vm113_vm0, %v652_v51 }
 0x1e8   :  { %v634_v3 = vmax.f32 %v576_v63, 0.0 }
 0x1e9   :  { %v632_v4 = vmax.f32 %v568_v2, 0.0 }
 0x1ea   :  { %v654_v5 = vpack.c.bf16 %v634_v3, %v633_v62 }
 0x1eb   :  { %v653_v6 = vpack.c.bf16 %v632_v4, %v631_v1  ;;  %v971_v7 = vpop.f32.mrb[24].mxu1 }
 0x1ec   :  { %v589_v10 = vadd.f32 %v971_v7, %v1262_v44  ;;  %v580_v11 = vpop.f32.mrb[25].mxu1 }
 0x1ed   :  { %v581_v12 = vadd.f32 %v1262_v44, %v580_v11  ;;  %v972_v13 = vpop.f32.mrb[26].mxu1 }
 0x1ee   :  { %886 = vmatpush3.bf16.xpose.msra.mxu0 %v699_v59  ;;  %v637_v14 = vmax.f32 %v589_v10, 0.0  ;;  %v592_v15 = vadd.f32 %v972_v13, %v1262_v44  ;;  %v583_v16 = vpop.f32.mrb[27].mxu1 }
 0x1ef   :  { %979 = vmatprep.subr.msk.bf16.mxu0 %vm113_vm0, %v653_v6  ;;  %v635_v17 = vmax.f32 %v581_v12, 0.0  ;;  %v584_v18 = vadd.f32 %v1262_v44, %v583_v16 }
 0x1f0   :  { %v638_v19 = vmax.f32 %v592_v15, 0.0 }
 0x1f1   :  { %v636_v20 = vmax.f32 %v584_v18, 0.0 }
 0x1f2   :  { %v656_v21 = vpack.c.bf16 %v638_v19, %v637_v14 }
 0x1f3   :  { %v655_v24 = vpack.c.bf16 %v636_v20, %v635_v17  ;;  %v975_v25 = vpop.f32.mrb[28].mxu1 }
 0x1f4   :  { %v605_v58 = vadd.f32 %v975_v25, %v1262_v44  ;;  %v596_v26 = vpop.f32.mrb[29].mxu1 }
 0x1f5   :  { %v597_v28 = vadd.f32 %v1262_v44, %v596_v26  ;;  %v976_v29 = vpop.f32.mrb[30].mxu1 }
 0x1f6   :  { %888 = vmatpush3.bf16.xpose.msra.mxu0 %v702_v27  ;;  %v641_v30 = vmax.f32 %v605_v58, 0.0  ;;  %v608_v31 = vadd.f32 %v976_v29, %v1262_v44  ;;  %v599_v32 = vpop.f32.mrb[31].mxu1 }
 0x1f7   :  { %980 = vmatprep.subr.msk.bf16.mxu0 %vm113_vm0, %v654_v5  ;;  %v639_v33 = vmax.f32 %v597_v28, 0.0  ;;  %v600_v34 = vadd.f32 %v1262_v44, %v599_v32  ;;  %v714_v44 = vsel %vm113_vm0, %v1294_v37, 0 }
 0x1f8   :  { %v642_v35 = vmax.f32 %v608_v31, 0.0 }
 0x1f9   :  { %v640_v38 = vmax.f32 %v600_v34, 0.0 }
 0x1fa   :  { %v658_v39 = vpack.c.bf16 %v642_v35, %v641_v30 }
 0x1fb   :  { %v657_v40 = vpack.c.bf16 %v640_v38, %v639_v33 }
 0x1fe   :  { %890 = vmatpush3.bf16.xpose.msra.mxu0 %v705_v9 }
 0x1ff   :  { %981 = vmatprep.subr.msk.bf16.mxu0 %vm113_vm0, %v655_v24 }
 0x206   :  { %892 = vmatpush3.bf16.xpose.msra.mxu0 %v708_v41 }
 0x207   :  { %982 = vmatprep.subr.msk.bf16.mxu0 %vm113_vm0, %v656_v21 }
 0x20e   :  { %894 = vmatpush3.bf16.xpose.msra.mxu0 %v711_v54 }
 0x20f   :  { %983 = vmatprep.subr.msk.bf16.mxu0 %vm113_vm0, %v657_v40 }
 0x216   :  { %896 = vmatpush3.bf16.xpose.msra.mxu0 %v714_v44 }
 0x217   :  { %984 = vmatprep.subr.msk.bf16.mxu0 %vm113_vm0, %v658_v39 }
 0x21e   :  { %898 = vmatpush3.bf16.xpose.msra.mxu0 %v717_v8 }
 0x225   :  { %900 = vmatmul.mubr.msk.bf16.vlgmr.msra.gmra.mrb[32].mxu0 %vm113_vm0, %v1252_v42 }
 0x2f8   :  { %v777_v43 = vpop.f32.mrb[32].mxu0 }
 0x2f9   :  { %v778_v45 = vadd.f32 %v777_v43, %v662_v23  ;;  %v779_v22 = vpop.f32.mrb[33].mxu0 }
 0x2fa   :  { %v780_v46 = vadd.f32 %v779_v22, %v662_v23  ;;  %v781_v47 = vpop.f32.mrb[34].mxu0 }
 0x2fb   :  { %v784_v48 = vmax.f32 %v778_v45, 0.0  ;;  %v782_v37 = vpop.f32.mrb[35].mxu0 }
 0x2fc   :  { %v785_v49 = vmax.f32 %v780_v46, 0.0 }
 0x2fd   :  { %786 = vst [vmem:[#allocation2] sm:$0xff] %v784_v48 }
 0x2fe   :  { %787 = vst [vmem:[#allocation2 + $0x8] sm:$0xff] %v785_v49 }
 0x2ff   :  { %1008 = shalt.err (!%p1005_p4)
}
 0x300   :  { %s1009_s13 = scalar_lea.hbm %s1357_s7, 256 }
 0x301   :  { %p1010_p5 = scmp.ne.s32.totalorder %s1357_s7, %s1009_s13  ;;  %p1013_p6 = scmp.lt.u32.totalorder %s1009_s13, %s1357_s7 }
 0x303   :  { %p1015_p7 = pnand %p1013_p6, %p1010_p5 }
 0x305   :  { %1018 = shalt.err (!%p1015_p7)
}
 0x306   :  { %797 = dma.vmem_to_hbm [thread:$0]  %s795_s5, 256, %s1357_s7, [#allocation3]  }
 0x307   :  { %1019 = dma.done.wait [#allocation3], 256  }
 0x308   :  { %1020 = vsyncadd [#allocation3], 4294967040 }
 0x309   :  { %801 = vsyncpa [#allocation3], 1 }

</bundles_post_ra>
